<compile_context>
chip_gen: v7x
topology: tpu7x:2x2x1
jax: 0.10.0
libtpu: 0.0.40
codegen_flags: <defaults>
</compile_context>

<pallas_src>
import functools

import jax
import jax.numpy as jnp
from jax.experimental import pallas as pl
from jax.experimental.pallas import tpu as pltpu


def _gelu_tanh(h):
    # tanh-approximate GELU; sqrt(2/pi) * 0.044715 pre-folded -> one fewer mul.
    h2 = h * h
    inner = h * (0.7978845608028654 + 0.035677408136300125 * h2)
    return 0.5 * h * (1.0 + jnp.tanh(inner))


def _tail(h_f32, b_blk, xr, out_dtype, tail_dtype):
    # bias + GELU + residual, in tail_dtype (bf16 for bf16 models, else f32).
    h = h_f32.astype(tail_dtype) + b_blk.astype(tail_dtype)
    h = _gelu_tanh(h)
    return (h + xr.astype(tail_dtype)).astype(out_dtype)


def _kernel_resident(x_ref, w_ref, b_ref, o_ref, *, tail_dtype, bf16_matmul):
    """Whole W and bias resident in VMEM; column block sliced in-kernel."""
    tn = o_ref.shape[1]
    off = pl.multiple_of(pl.program_id(1) * tn, 128)
    lhs = x_ref[...]
    rhs = w_ref[:, pl.ds(off, tn)]
    if bf16_matmul:
        lhs = lhs.astype(jnp.bfloat16)
        rhs = rhs.astype(jnp.bfloat16)
    h = jnp.dot(lhs, rhs, preferred_element_type=jnp.float32)
    o_ref[...] = _tail(h, b_ref[:, pl.ds(off, tn)], x_ref[:, pl.ds(off, tn)],
                       o_ref.dtype, tail_dtype)


def _kernel_streamed(x_ref, w_ref, b_ref, o_ref, *, tail_dtype, bf16_matmul):
    """W streamed as (D, tn) column blocks; bias VMEM-resident; residual
    sliced from the already-resident LHS tile (no duplicate x stream)."""
    tn = o_ref.shape[1]
    off = pl.multiple_of(pl.program_id(1) * tn, 128)
    lhs = x_ref[...]
    rhs = w_ref[...]
    if bf16_matmul:
        lhs = lhs.astype(jnp.bfloat16)
        rhs = rhs.astype(jnp.bfloat16)
    h = jnp.dot(lhs, rhs, preferred_element_type=jnp.float32)
    o_ref[...] = _tail(h, b_ref[:, pl.ds(off, tn)], x_ref[:, pl.ds(off, tn)],
                       o_ref.dtype, tail_dtype)


def _round_up(x, m):
    return (x + m - 1) // m * m


@functools.lru_cache(maxsize=1)
def _device_vmem_bytes():
    try:
        return int(pltpu.get_tpu_info().vmem_capacity_bytes)
    except Exception:
        return 64 << 20  # conservative fallback: v7x per-TensorCore VMEM


@functools.partial(jax.jit, static_argnames=("tm", "tn", "bf16_matmul"))
def residual_add(x, w, b, *, tm=512, tn=512, bf16_matmul=False):
    """ResidualAdd(fn)(x) with fn = Linear(D, D) -> GELU, fused in one kernel.

    x: (B, N, D); w: (D, D) (y = x @ w + b); b: (D,) or (1, D).
    Returns gelu(x @ w + b) + x, same shape/dtype as x.
    """
    B, N, D = x.shape
    M = B * N
    x2 = x.reshape(M, D)
    b2 = b.reshape(1, -1)

    # Lane padding only (rare): pad the feature dim to a multiple of 128 so all
    # tiles are lane-dense.  Padded x cols / W rows are zero, so padded output
    # columns are exactly gelu(0) + 0 and are sliced off again below.
    Dp = _round_up(D, 128)
    if Dp != D:
        x2 = jnp.pad(x2, ((0, 0), (0, Dp - D)))
        w = jnp.pad(w, ((0, Dp - D), (0, Dp - D)))
        b2 = jnp.pad(b2, ((0, 0), (0, Dp - D)))

    if bf16_matmul and w.dtype == jnp.float32:
        w = w.astype(jnp.bfloat16)

    x_sz = jnp.dtype(x.dtype).itemsize
    w_sz = jnp.dtype(w.dtype).itemsize
    b_sz = jnp.dtype(b2.dtype).itemsize
    o_sz = x_sz

    # bf16 VPU/EUP exist on v6e/v7x: bf16 models run the elementwise tail in
    # bf16; otherwise (and for the MXU accumulation always) stay in f32.
    tail_dtype = jnp.bfloat16 if x.dtype == jnp.bfloat16 else jnp.float32

    # ---- Device-aware VMEM policy ------------------------------------------
    vmem_cap = _device_vmem_bytes()            # 128 MiB (v5e/v6e) / 64 MiB (v7x)
    budget = vmem_cap - (8 << 20)              # leave compiler headroom
    resident_budget = min(vmem_cap // 3, 44 << 20)   # ~42 MiB v5e/v6e, ~21 MiB v7x

    w_bytes = Dp * Dp * w_sz
    b_bytes = Dp * b_sz
    resident_w = (w_bytes + b_bytes) <= resident_budget

    # ---- Column tiling: cap tn so the f32 intermediate / output tile stay
    # vreg- and VMEM-friendly even when W is resident.
    tn = max(128, min(int(tn), 512))
    if Dp <= tn:
        tn = Dp
    else:
        tn = next(c for c in (512, 384, 256, 128) if c <= tn and Dp % c == 0)
    n_col = Dp // tn

    # ---- Row tiling: as large as the VMEM budget allows (fewer grid steps,
    # fewer W column-block re-reads in the streamed regime).
    sub = 8 * max(1, 4 // x_sz)                # sublane packing: 8 f32 / 16 bf16
    if resident_w:
        fixed = w_bytes + b_bytes              # single copy, not double-buffered
    else:
        fixed = 2 * Dp * tn * w_sz + b_bytes   # double-buffered W column blocks
    per_row = 2 * Dp * x_sz + 2 * tn * o_sz + 3 * tn * 4   # x/out tiles + f32 slack
    tm_fit = max(sub, ((budget - fixed) // per_row // sub) * sub)
    tm = max(sub, min((min(int(tm), 1024) // sub) * sub, tm_fit))
    if M <= tm:
        tm = M                                 # full-extent row block is always legal
    n_row = pl.cdiv(M, tm)
    # TODO(synk): for very large D (streamed W blocks alone near the VMEM
    # budget) switch to a K-tiled 3-D grid with an f32 accumulator scratch.

    est = fixed + tm * per_row
    vmem_limit = int(max(32 << 20, min(budget, int(1.25 * est))))

    # ---- Grid / specs --------------------------------------------------------
    # x's block index is constant along the inner (column) axis, so each row
    # panel is fetched from HBM exactly once and reused for all column blocks.
    grid = (n_row, n_col)
    x_spec = pl.BlockSpec((tm, Dp), lambda i, j: (i, 0))
    out_spec = pl.BlockSpec((tm, tn), lambda i, j: (i, j))
    b_spec = pl.BlockSpec(memory_space=pltpu.MemorySpace.VMEM)   # whole bias resident

    kern = functools.partial(
        _kernel_resident if resident_w else _kernel_streamed,
        tail_dtype=tail_dtype, bf16_matmul=bool(bf16_matmul))

    if resident_w:
        in_specs = [
            x_spec,
            pl.BlockSpec(memory_space=pltpu.MemorySpace.VMEM),   # whole W, read once
            b_spec,
        ]
    else:
        in_specs = [
            x_spec,
            pl.BlockSpec((Dp, tn), lambda i, j: (0, j)),         # W column block
            b_spec,
        ]

    out2 = pl.pallas_call(
        kern,
        out_shape=jax.ShapeDtypeStruct((M, Dp), x.dtype),
        grid=grid,
        in_specs=in_specs,
        out_specs=out_spec,
        compiler_params=pltpu.CompilerParams(
            dimension_semantics=("parallel", "arbitrary"),
            vmem_limit_bytes=vmem_limit,
        ),
    )(x2, w, b2)

    if Dp != D:
        out2 = out2[:, :D]
    return out2.reshape(B, N, D)


def reference(x, w, b):
    xf = x.astype(jnp.float32)
    h = jnp.einsum("bnd,de->bne", xf, w.astype(jnp.float32),
                   precision=jax.lax.Precision.HIGHEST)
    h = h + b.reshape(1, 1, -1).astype(jnp.float32)
    h = _gelu_tanh(h)
    return (h + xf).astype(x.dtype)


if __name__ == "__main__":
    # Small but lane-dense demo shapes: D is a multiple of 128.
    B, N, D = 2, 8, 128
    key = jax.random.PRNGKey(0)
    kx, kw, kb = jax.random.split(key, 3)

    x = jax.random.normal(kx, (B, N, D), dtype=jnp.float32)
    # Deterministic parameter init for the synthetic `fn` (Linear(D, D)).
    w = jax.random.normal(kw, (D, D), dtype=jnp.float32) * (1.0 / jnp.sqrt(D))
    b = jax.random.normal(kb, (1, D), dtype=jnp.float32) * 0.01

    out = residual_add(x, w, b)
    jax.block_until_ready(out)

    ref = reference(x, w, b)
    assert out.shape == x.shape
    assert jnp.allclose(out, ref, atol=1e-3, rtol=1e-3), "mismatch vs reference"

    print("KERNEL_OK")
</pallas_src>

<mosaic_0001>
module attributes {stable_mosaic.version = 11 : i64} {
  func.func @_kernel_resident(%arg0: i32, %arg1: i32, %arg2: memref<16x128xf32, #tpu.memory_space<vmem>>, %arg3: memref<128x128xf32, #tpu.memory_space<vmem>>, %arg4: memref<1x128xf32, #tpu.memory_space<vmem>>, %arg5: memref<16x128xf32, #tpu.memory_space<vmem>>) attributes {dimension_semantics = [#tpu.dimension_semantics<parallel>, #tpu.dimension_semantics<arbitrary>], iteration_bounds = array<i64: 1, 1>, scalar_prefetch = 0 : i64, scratch_operands = 0 : i64, tpu.core_type = #tpu.core_type<tc>, window_params = [{transform_indices = @transform_0, window_bounds = array<i64: 16, 128>}, {pipeline_mode = #tpu.pipeline_mode<synchronous>, transform_indices = @transform_1, window_bounds = array<i64: 128, 128>}, {pipeline_mode = #tpu.pipeline_mode<synchronous>, transform_indices = @transform_2, window_bounds = array<i64: 1, 128>}, {transform_indices = @transform_3, window_bounds = array<i64: 16, 128>}]} {
    %c128_i32 = arith.constant 128 : i32
    %0 = arith.muli %arg1, %c128_i32 : i32
    %1 = tpu.assume_multiple %0, 128 : i32
    %c0 = arith.constant 0 : index
    %c0_0 = arith.constant 0 : index
    %2 = vector.load %arg2[%c0, %c0_0] : memref<16x128xf32, #tpu.memory_space<vmem>>, vector<16x128xf32>
    %c0_1 = arith.constant 0 : index
    %3 = arith.index_cast %1 : i32 to index
    %4 = vector.load %arg3[%c0_1, %3] : memref<128x128xf32, #tpu.memory_space<vmem>>, vector<128x128xf32>
    %cst = arith.constant dense<0.000000e+00> : vector<16x128xf32>
    %5 = tpu.matmul %2, %4, %cst {dimension_numbers = #tpu.dot_dimension_numbers<[1], [0], [0], [1], [0, 0, 1, 1], [], []>} : vector<16x128xf32>, vector<128x128xf32>, vector<16x128xf32> -> vector<16x128xf32>
    %c0_2 = arith.constant 0 : index
    %6 = arith.index_cast %1 : i32 to index
    %7 = vector.load %arg4[%c0_2, %6] : memref<1x128xf32, #tpu.memory_space<vmem>>, vector<1x128xf32>
    %c0_3 = arith.constant 0 : index
    %8 = arith.index_cast %1 : i32 to index
    %9 = vector.load %arg2[%c0_3, %8] : memref<16x128xf32, #tpu.memory_space<vmem>>, vector<16x128xf32>
    %10 = vector.broadcast %7 : vector<1x128xf32> to vector<16x128xf32>
    %11 = arith.addf %5, %10 : vector<16x128xf32>
    %12 = arith.mulf %11, %11 : vector<16x128xf32>
    %cst_4 = arith.constant 0.0356774069 : f32
    %13 = vector.broadcast %cst_4 : f32 to vector<16x128xf32>
    %14 = arith.mulf %13, %12 : vector<16x128xf32>
    %cst_5 = arith.constant 0.797884583 : f32
    %15 = vector.broadcast %cst_5 : f32 to vector<16x128xf32>
    %16 = arith.addf %15, %14 : vector<16x128xf32>
    %17 = arith.mulf %11, %16 : vector<16x128xf32>
    %cst_6 = arith.constant 5.000000e-01 : f32
    %18 = vector.broadcast %cst_6 : f32 to vector<16x128xf32>
    %19 = arith.mulf %18, %11 : vector<16x128xf32>
    %20 = math.tanh %17 : vector<16x128xf32>
    %cst_7 = arith.constant 1.000000e+00 : f32
    %21 = vector.broadcast %cst_7 : f32 to vector<16x128xf32>
    %22 = arith.addf %21, %20 : vector<16x128xf32>
    %23 = arith.mulf %19, %22 : vector<16x128xf32>
    %24 = arith.addf %23, %9 : vector<16x128xf32>
    %c0_8 = arith.constant 0 : index
    %c0_9 = arith.constant 0 : index
    %25 = vector.load %arg5[%c0_8, %c0_9] : memref<16x128xf32, #tpu.memory_space<vmem>>, vector<16x128xf32>
    tpu.vector_store %arg5[%c0_8, %c0_9], %24 {strides = array<i32>} : memref<16x128xf32, #tpu.memory_space<vmem>>, vector<16x128xf32>,
    return
  }
  func.func @transform_0(%arg0: i32, %arg1: i32) -> (i32, i32) {
    %c0_i32 = arith.constant 0 : i32
    %c0_i32_0 = arith.constant 0 : i32
    return %arg0, %c0_i32 : i32, i32
  }
  func.func @transform_1(%arg0: i32, %arg1: i32) -> (i32, i32) {
    %c0_i32 = arith.constant 0 : i32
    %c0_i32_0 = arith.constant 0 : i32
    %c0_i32_1 = arith.constant 0 : i32
    return %c0_i32, %c0_i32_0 : i32, i32
  }
  func.func @transform_2(%arg0: i32, %arg1: i32) -> (i32, i32) {
    %c0_i32 = arith.constant 0 : i32
    %c0_i32_0 = arith.constant 0 : i32
    %c0_i32_1 = arith.constant 0 : i32
    return %c0_i32, %c0_i32_0 : i32, i32
  }
  func.func @transform_3(%arg0: i32, %arg1: i32) -> (i32, i32) {
    %c0_i32 = arith.constant 0 : i32
    return %arg0, %arg1 : i32, i32
  }
}

</mosaic_0001>

<bundles_post_ra>
// kernel: residual_add.1
= control target key start
LH: loop header
LB: loop body
LE: loop exit
PB: predicated region body
PF: predicated region fallthrough
CT: control target
= control target key end

     0   :  { %8 = vsyncpa [#allocation3], 0  ;;  %s432_s0 = inlined_call_operand.hbm [shape: f32[16,128], index: 0, kind: input, shape index: {}]   ;;  %s433_s1 = inlined_call_operand.hbm [shape: f32[128,128], index: 1, kind: input, shape index: {}]   ;;  %s434_s2 = inlined_call_operand.vmem [shape: f32[1,128], index: 2, kind: input, shape index: {}]   ;;  %s435_s3 = inlined_call_operand.hbm [shape: f32[16,128], index: 3, kind: output, shape index: {}]  }
   0x1   :  { %9 = vsyncpa [#allocation6], 0 }
   0x2   :  { %10 = vsyncpa [#allocation4], 0  ;;  %s359_s12 = smov [#allocation2]   ;;  %s287_s16 = scalar_lea.hbm %s432_s0, 256 }
   0x3   :  { %s16_s13 = sshll.u32 %s359_s12, 4  ;;  %p288_p0 = scmp.ne.s32.totalorder %s432_s0, %s287_s16  ;;  %s17_s13 = int_to_ptr.vmem [resolvable:$true] %s16_s13 }
   0x4   :  { %p291_p1 = scmp.lt.u32.totalorder %s287_s16, %s432_s0 }
   0x6   :  { %p293_p2 = pnand %p291_p1, %p288_p0 }
   0x8   :  { %296 = shalt.err (!%p293_p2)
}
   0x9   :  { %s297_s21 = scalar_lea.vmem %s17_s13, 256  ;;  %p302_p4 = scmp.lt.s32.totalorder %s17_s13, %s17_s13 }
   0xa   :  { %p298_p3 = scmp.ne.s32.totalorder %s17_s13, %s297_s21  ;;  %p303_p5 = scmp.lt.s32.totalorder %s297_s21, %s297_s21 }
   0xc   :  { %p304_p6 = por %p303_p5, %p302_p4 }
   0xe   :  { %p305_p7 = pnand %p304_p6, %p298_p3 }
  0x10   :  { %308 = shalt.err (!%p305_p7)
}
  0x11   :  { %s360_s22 = smov 128   ;;  %s361_s23 = smov 8  }
  0x12   :  { %22 = dma.hbm_to_vmem [thread:$0]  %s432_s0, 256, %s17_s13, [#allocation3], %s360_s22, %s360_s22, %s361_s23  }
  0x13   :  { %s362_s26 = smov [#allocation5]   ;;  %s309_s30 = scalar_lea.hbm %s433_s1, 2048 }
  0x14   :  { %s28_s27 = sshll.u32 %s362_s26, 4  ;;  %p310_p8 = scmp.ne.s32.totalorder %s433_s1, %s309_s30  ;;  %s29_s27 = int_to_ptr.vmem [resolvable:$true] %s28_s27 }
  0x15   :  { %p313_p9 = scmp.lt.u32.totalorder %s309_s30, %s433_s1 }
  0x17   :  { %p315_p10 = pnand %p313_p9, %p310_p8 }
  0x19   :  { %318 = shalt.err (!%p315_p10)
}
  0x1a   :  { %s319_s8 = scalar_lea.vmem %s29_s27, 2048  ;;  %p324_p12 = scmp.lt.s32.totalorder %s29_s27, %s29_s27 }
  0x1b   :  { %p320_p11 = scmp.ne.s32.totalorder %s29_s27, %s319_s8  ;;  %p325_p13 = scmp.lt.s32.totalorder %s319_s8, %s319_s8 }
  0x1d   :  { %p326_p0 = por %p325_p13, %p324_p12 }
  0x1f   :  { %p327_p1 = pnand %p326_p0, %p320_p11 }
  0x21   :  { %330 = shalt.err (!%p327_p1)
}
  0x22   :  { %34 = dma.hbm_to_vmem [thread:$0]  %s433_s1, 2048, %s29_s27, [#allocation6], %s360_s22, %s360_s22, %s361_s23  }
  0x23   :  { %353 = dma.done.wait [#allocation3], 256  }
  0x24   :  { %354 = vsyncadd [#allocation3], 4294967040 }
  0x25   :  { %355 = dma.done.wait [#allocation6], 2048  }
  0x26   :  { %356 = vsyncadd [#allocation6], 4294965248  ;;  %v49_v0 = vld [vmem:[#allocation5] sm:$0xff]  ;;  %v50_v1 = vld [vmem:[#allocation5 + $0x8] sm:$0xff] }
  0x27   :  { %v51_v2 = vld [vmem:[#allocation5 + $0x10] sm:$0xff]  ;;  %v246_v3 = vpack.c.bf16 %v50_v1, %v49_v0  ;;  %v52_v4 = vld [vmem:[#allocation5 + $0x18] sm:$0xff]  ;;  %v53_v6 = vld [vmem:[#allocation5 + $0x20] sm:$0xff] }
  0x28   :  { %v250_v5 = vpack.c.bf16 %v52_v4, %v51_v2  ;;  %v54_v7 = vld [vmem:[#allocation5 + $0x28] sm:$0xff]  ;;  %v44_v9 = vld [vmem:[#allocation2] sm:$0xff]  ;;  %v56_v11 = vld [vmem:[#allocation5 + $0x38] sm:$0xff] }
  0x29   :  { %247 = vmatprep.subr.bf16.mxu0 %v246_v3  ;;  %v254_v8 = vpack.c.bf16 %v54_v7, %v53_v6  ;;  %v55_v10 = vld [vmem:[#allocation5 + $0x30] sm:$0xff]  ;;  %243 = vmatprep.mubr.f32.mxu0 %v44_v9  ;;  %v57_v13 = vld [vmem:[#allocation5 + $0x40] sm:$0xff]  ;;  %v58_v14 = vld [vmem:[#allocation5 + $0x48] sm:$0xff] }
  0x2a   :  { %249 = vmatpush3.bf16.msra.mxu0 %v246_v3  ;;  %v258_v12 = vpack.c.bf16 %v56_v11, %v55_v10  ;;  %v262_v15 = vpack.c.bf16 %v58_v14, %v57_v13  ;;  %v59_v16 = vld [vmem:[#allocation5 + $0x50] sm:$0xff]  ;;  %v60_v17 = vld [vmem:[#allocation5 + $0x58] sm:$0xff]  ;;  %v61_v19 = vld [vmem:[#allocation5 + $0x60] sm:$0xff] }
  0x2b   :  { %251 = vmatprep.subr.bf16.mxu0 %v250_v5  ;;  %v266_v18 = vpack.c.bf16 %v60_v17, %v59_v16  ;;  %v62_v20 = vld [vmem:[#allocation5 + $0x68] sm:$0xff]  ;;  %v63_v22 = vld [vmem:[#allocation5 + $0x70] sm:$0xff]  ;;  %v64_v23 = vld [vmem:[#allocation5 + $0x78] sm:$0xff] }
  0x2c   :  { %v270_v21 = vpack.c.bf16 %v62_v20, %v61_v19  ;;  %v274_v24 = vpack.c.bf16 %v64_v23, %v63_v22  ;;  %v45_v25 = vld [vmem:[#allocation2 + $0x8] sm:$0xff]  ;;  %v192_v26 = vld [vmem:[%s434_s2] ss:$0 sm:$0xff]  ;;  %s363_s2 = smov [#allocation7]  }
  0x2d   :  { %s176_s11 = sshll.u32 %s363_s2, 4  ;;  %s177_s11 = int_to_ptr.vmem [resolvable:$true] %s176_s11 }
  0x2e   :  { %253 = vmatpush3.bf16.msra.mxu0 %v250_v5  ;;  %s331_s12 = scalar_lea.vmem %s177_s11, 256  ;;  %p336_p3 = scmp.lt.s32.totalorder %s177_s11, %s177_s11 }
  0x2f   :  { %255 = vmatprep.subr.bf16.mxu0 %v254_v8  ;;  %p332_p2 = scmp.ne.s32.totalorder %s177_s11, %s331_s12  ;;  %p337_p4 = scmp.lt.s32.totalorder %s331_s12, %s331_s12 }
  0x31   :  { %p338_p5 = por %p337_p4, %p336_p3 }
  0x32   :  { %257 = vmatpush3.bf16.msra.mxu0 %v254_v8 }
  0x33   :  { %259 = vmatprep.subr.bf16.mxu0 %v258_v12  ;;  %p339_p6 = pnand %p338_p5, %p332_p2 }
  0x36   :  { %261 = vmatpush3.bf16.msra.mxu0 %v258_v12 }
  0x37   :  { %263 = vmatprep.subr.bf16.mxu0 %v262_v15 }
  0x3a   :  { %265 = vmatpush3.bf16.msra.mxu0 %v262_v15 }
  0x3b   :  { %267 = vmatprep.subr.bf16.mxu0 %v266_v18 }
  0x3e   :  { %269 = vmatpush3.bf16.msra.mxu0 %v266_v18 }
  0x3f   :  { %271 = vmatprep.subr.bf16.mxu0 %v270_v21 }
  0x42   :  { %273 = vmatpush3.bf16.msra.mxu0 %v270_v21 }
  0x43   :  { %275 = vmatprep.subr.bf16.mxu0 %v274_v24 }
  0x46   :  { %277 = vmatpush3.bf16.msra.mxu0 %v274_v24 }
  0x49   :  { %244 = vmatmul.mubr.f32.vlgmr.msra.gmra.mrb[0].mxu0 %v45_v25 }
 0x11c   :  { %v245_v27 = vpop.f32.mrb[0].mxu0 }
 0x11d   :  { %v148_v28 = vadd.f32 %v245_v27, %v192_v26  ;;  %v142_v29 = vpop.f32.mrb[1].mxu0 }
 0x11e   :  { %v143_v30 = vadd.f32 %v192_v26, %v142_v29 }
 0x11f   :  { %v152_v31 = vmul.f32 %v148_v28, %v148_v28  ;;  %v160_v41 = vmul.f32 0.5, %v148_v28 }
 0x120   :  { %v151_v32 = vmul.f32 %v143_v30, %v143_v30  ;;  %v159_v43 = vmul.f32 0.5, %v143_v30 }
 0x121   :  { %v154_v33 = vmul.f32 0.035677407, %v152_v31 }
 0x122   :  { %v153_v34 = vmul.f32 0.035677407, %v151_v32 }
 0x123   :  { %v156_v35 = vadd.f32 0.7978846, %v154_v33 }
 0x124   :  { %v155_v36 = vadd.f32 0.7978846, %v153_v34 }
 0x125   :  { %v158_v37 = vmul.f32 %v156_v35, %v148_v28 }
 0x126   :  { %v157_v38 = vmul.f32 %v155_v36, %v143_v30 }
 0x127   :  { %283 = vtanh.f32 %v158_v37 }
 0x128   :  { %285 = vtanh.f32 %v157_v38 }
 0x131   :  { %v284_v39 = vpop.eup %283 }
 0x132   :  { %v286_v40 = vpop.eup %285  ;;  %v164_v42 = vadd.f32 1.0, %v284_v39 }
 0x133   :  { %v163_v44 = vadd.f32 1.0, %v286_v40 }
 0x134   :  { %v166_v45 = vmul.f32 %v164_v42, %v160_v41 }
 0x135   :  { %v165_v46 = vmul.f32 %v163_v44, %v159_v43 }
 0x136   :  { %v168_v47 = vadd.f32 %v166_v45, %v45_v25 }
 0x137   :  { %v167_v48 = vadd.f32 %v165_v46, %v44_v9 }
 0x138   :  { %170 = vst [vmem:[#allocation7 + $0x8] sm:$0xff] %v168_v47 }
 0x139   :  { %169 = vst [vmem:[#allocation7] sm:$0xff] %v167_v48 }
 0x13a   :  { %342 = shalt.err (!%p339_p6)
}
 0x13b   :  { %s343_s15 = scalar_lea.hbm %s435_s3, 256 }
 0x13c   :  { %p344_p7 = scmp.ne.s32.totalorder %s435_s3, %s343_s15  ;;  %p347_p8 = scmp.lt.u32.totalorder %s343_s15, %s435_s3 }
 0x13e   :  { %p349_p9 = pnand %p347_p8, %p344_p7 }
 0x140   :  { %352 = shalt.err (!%p349_p9)
}
 0x141   :  { %182 = dma.vmem_to_hbm [thread:$0]  %s177_s11, 256, %s435_s3, [#allocation4], %s360_s22, %s360_s22, %s361_s23  }
 0x142   :  { %357 = dma.done.wait [#allocation4], 256  }
 0x143   :  { %358 = vsyncadd [#allocation4], 4294967040 }
 0x144   :  { %186 = vsyncpa [#allocation3], 1 }
 0x145   :  { %187 = vsyncpa [#allocation6], 1 }
 0x146   :  { %188 = vsyncpa [#allocation4], 1 }

</bundles_post_ra>
